<compile_context>
chip_gen: v5e
topology: v5e:2x2
jax: 0.10.0
libtpu: 0.0.40
codegen_flags: <defaults>
</compile_context>

<pallas_src>
import functools

import jax
import jax.numpy as jnp
from jax.experimental import pallas as pl
from jax.experimental.pallas import tpu as pltpu


# ---------------------------------------------------------------------------
# Kernels
# ---------------------------------------------------------------------------
def _gcn_kernel(a_ref, y_ref, o_ref, acc_ref):
    # a_ref  : (tm, tk)       bf16   column-concatenated adjacency tile
    # y_ref  : (tk, out_pad)  bf16   stacked Y = X @ W_r tile
    # o_ref  : (tm, out_pad)  f32    output row tile (resident across k)
    # acc_ref: (tm, out_pad)  f32    VMEM accumulator scratch
    k = pl.program_id(1)

    @pl.when(k == 0)
    def _():
        acc_ref[...] = jnp.zeros_like(acc_ref)

    acc_ref[...] += jnp.dot(a_ref[...], y_ref[...],
                            preferred_element_type=jnp.float32)

    @pl.when(k == pl.num_programs(1) - 1)
    def _():
        o_ref[...] = acc_ref[...].astype(o_ref.dtype)


def _gcn_kernel_bias(a_ref, y_ref, b_ref, o_ref, acc_ref):
    k = pl.program_id(1)

    @pl.when(k == 0)
    def _():
        acc_ref[...] = jnp.zeros_like(acc_ref)

    acc_ref[...] += jnp.dot(a_ref[...], y_ref[...],
                            preferred_element_type=jnp.float32)

    @pl.when(k == pl.num_programs(1) - 1)
    def _():
        o_ref[...] = (acc_ref[...] + b_ref[...]).astype(o_ref.dtype)


# ---------------------------------------------------------------------------
# Wrapper
# ---------------------------------------------------------------------------
def _round_up(x, m):
    return ((x + m - 1) // m) * m


def prepare_adjacency(adj_mats, *, dtype=jnp.bfloat16):
    """Pad + column-concatenate the (static) adjacency ONCE at setup time.

    adj_mats: (R, E, E) -> A_cat: (E_pad, R*E_pad) in `dtype`.
    """
    R, E, _ = adj_mats.shape
    E_pad = _round_up(E, 128)
    a = jnp.zeros((R, E_pad, E_pad), dtype)
    a = a.at[:, :E, :E].set(adj_mats.astype(dtype))
    # (R, E_pad, E_pad) -> (E_pad, R*E_pad): A_cat[i, r*E_pad + j] = A_r[i, j]
    a_cat = jnp.transpose(a, (1, 0, 2)).reshape(E_pad, R * E_pad)
    return a_cat, E


@functools.partial(jax.jit, static_argnames=("n_entities", "row_tile", "k_tile"))
def gcn_layer_forward(inp, adj_cat, rel_weights, bias=None, *,
                      n_entities, row_tile=256, k_tile=2048):
    """inp: (E, in), adj_cat: (E_pad, R*E_pad) from prepare_adjacency,
    rel_weights: (R, in, out), bias: (out,) or None."""
    E = n_entities
    E_pad, K_total = adj_cat.shape
    R = K_total // E_pad
    out_size = rel_weights.shape[2]
    out_pad = _round_up(out_size, 128)

    # --- Precompute Y_r = X @ W_r once (tiny XLA einsum), stack row-wise. ---
    y = jnp.einsum("ei,rio->reo", inp.astype(jnp.float32),
                   rel_weights.astype(jnp.float32))          # (R, E, out)
    y_p = jnp.zeros((R, E_pad, out_pad), jnp.bfloat16)
    y_p = y_p.at[:, :E, :out_size].set(y.astype(jnp.bfloat16))
    y_p = y_p.reshape(K_total, out_pad)                       # (R*E_pad, out_pad)

    # --- Tile selection ------------------------------------------------------
    # Row tile: prefer >= 2 row tiles so the "parallel" axis can feed both
    # v7x TensorCores; fall back to 128 for small graphs.
    tm = max(row_tile, 128)
    while tm > 128 and (E_pad % tm != 0 or E_pad // tm < 2):
        tm //= 2
    if E_pad % tm != 0:
        tm = 128

    # K tile over the concatenated adjacency columns (K_total is a multiple
    # of 128, so tk=128 is always a valid fallback).
    tk = min(max(k_tile, 128), K_total)
    while K_total % tk != 0:
        tk -= 128

    grid = (E_pad // tm, K_total // tk)

    # --- VMEM budget (double-buffered tiles + accumulator) -------------------
    adj_itemsize = jnp.dtype(adj_cat.dtype).itemsize
    est_vmem = (2 * tm * tk * adj_itemsize      # adjacency tiles
                + 2 * tk * out_pad * 2          # Y tiles (bf16)
                + 2 * tm * out_pad * 4          # output tiles
                + tm * out_pad * 4              # accumulator scratch
                + out_pad * 4)                  # bias
    vmem_limit = int(min(max(4 * est_vmem, 32 * 1024 * 1024), 64 * 1024 * 1024))

    flops = 2 * E_pad * K_total * out_pad
    bytes_accessed = (E_pad * K_total * adj_itemsize
                      + K_total * out_pad * 2
                      + E_pad * out_pad * 4
                      + out_pad * 4)

    # --- Specs ---------------------------------------------------------------
    in_specs = [
        pl.BlockSpec((tm, tk), lambda i, k: (i, k)),          # adjacency tile
        pl.BlockSpec((tk, out_pad), lambda i, k: (k, 0)),     # Y tile
    ]
    args = [adj_cat, y_p]
    if bias is not None:
        b_p = jnp.zeros((1, out_pad), jnp.float32)
        b_p = b_p.at[0, :out_size].set(bias.astype(jnp.float32))
        in_specs.append(pl.BlockSpec((1, out_pad), lambda i, k: (0, 0)))
        args.append(b_p)
        kernel = _gcn_kernel_bias
    else:
        kernel = _gcn_kernel                                  # no dead bias add

    out_p = pl.pallas_call(
        kernel,
        out_shape=jax.ShapeDtypeStruct((E_pad, out_pad), jnp.float32),
        grid_spec=pltpu.PrefetchScalarGridSpec(
            num_scalar_prefetch=0,
            grid=grid,
            in_specs=in_specs,
            out_specs=pl.BlockSpec((tm, out_pad), lambda i, k: (i, 0)),
            scratch_shapes=[pltpu.VMEM((tm, out_pad), jnp.float32)],
        ),
        compiler_params=pltpu.CompilerParams(
            dimension_semantics=("parallel", "arbitrary"),
            vmem_limit_bytes=vmem_limit),
        cost_estimate=pl.CostEstimate(
            flops=flops, transcendentals=0, bytes_accessed=bytes_accessed),
    )(*args)

    # Strip padding.
    return out_p[:E, :out_size]


# ---------------------------------------------------------------------------
# Demo / correctness check
# ---------------------------------------------------------------------------
def _xavier_uniform(key, shape):
    fan_in, fan_out = shape[-2], shape[-1]
    limit = (6.0 / (fan_in + fan_out)) ** 0.5
    return jax.random.uniform(key, shape, jnp.float32, -limit, limit)


if __name__ == "__main__":
    # Small config consistent with the module's __init__ (n_basis > 0 path).
    total_rel, n_basis = 4, 3
    in_size, out_size = 32, 32
    E = 16  # number of entities in the graph

    key = jax.random.PRNGKey(0)
    k_bw, k_bc, k_x, k_adj = jax.random.split(key, 4)

    basis_weights = _xavier_uniform(k_bw, (n_basis, in_size, out_size))
    basis_coeff = _xavier_uniform(k_bc, (total_rel, n_basis))

    inp = jax.random.normal(k_x, (E, in_size), jnp.float32)
    # Dense stand-in for the sparse adjacency matrices (R, E, E), 0/1 values.
    adj_mats = (jax.random.uniform(k_adj, (total_rel, E, E), jnp.float32)
                < 0.2).astype(jnp.float32)

    # Glue: basis combination (einsum 'rb,bio->rio').
    rel_weights = jnp.einsum("rb,bio->rio", basis_coeff, basis_weights)

    # Adjacency is static graph structure: pad / cast / concat ONCE at setup.
    adj_cat, _ = prepare_adjacency(adj_mats, dtype=jnp.bfloat16)

    out = gcn_layer_forward(inp, adj_cat, rel_weights, bias=None, n_entities=E)
    out = jax.block_until_ready(out)

    # Reference: exact PyTorch-forward semantics (concat then single matmul).
    tmp = jnp.concatenate([adj_mats[r] @ inp for r in range(total_rel)], axis=1)
    ref = tmp @ rel_weights.reshape(total_rel * in_size, out_size)

    assert out.shape == (E, out_size)
    # bf16 MXU inputs (f32 accumulation) -> relaxed tolerance vs f32 reference.
    err = float(jnp.max(jnp.abs(out - ref)))
    assert jnp.allclose(out, ref, atol=5e-2, rtol=5e-2), f"max abs err {err}"

    print("KERNEL_OK")
</pallas_src>

<mosaic_0001>
module attributes {stable_mosaic.version = 11 : i64} {
  func.func @_gcn_kernel(%arg0: i32, %arg1: i32, %arg2: memref<128x512xbf16, #tpu.memory_space<vmem>>, %arg3: memref<512x128xbf16, #tpu.memory_space<vmem>>, %arg4: memref<128x128xf32, #tpu.memory_space<vmem>>, %arg5: memref<128x128xf32, #tpu.memory_space<vmem>>) attributes {dimension_semantics = [#tpu.dimension_semantics<parallel>, #tpu.dimension_semantics<arbitrary>], iteration_bounds = array<i64: 1, 1>, scalar_prefetch = 0 : i64, scratch_operands = 1 : i64, tpu.core_type = #tpu.core_type<tc>, window_params = [{transform_indices = @transform_0, window_bounds = array<i64: 128, 512>}, {transform_indices = @transform_1, window_bounds = array<i64: 512, 128>}, {transform_indices = @transform_2, window_bounds = array<i64: 128, 128>}]} {
    %c0_i32 = arith.constant 0 : i32
    %0 = arith.cmpi eq, %arg1, %c0_i32 : i32
    %1 = arith.extui %0 : i1 to i32
    %c0_i32_0 = arith.constant 0 : i32
    %2 = arith.cmpi ne, %1, %c0_i32_0 : i32
    scf.if %2 {
      %cst_10 = arith.constant 0.000000e+00 : f32
      %12 = vector.broadcast %cst_10 : f32 to vector<128x128xf32>
      %c0_11 = arith.constant 0 : index
      %c0_12 = arith.constant 0 : index
      %13 = vector.load %arg5[%c0_11, %c0_12] : memref<128x128xf32, #tpu.memory_space<vmem>>, vector<128x128xf32>
      tpu.vector_store %arg5[%c0_11, %c0_12], %12 {strides = array<i32>} : memref<128x128xf32, #tpu.memory_space<vmem>>, vector<128x128xf32>,
    } else {
    }
    %c0 = arith.constant 0 : index
    %c0_1 = arith.constant 0 : index
    %3 = vector.load %arg5[%c0, %c0_1] : memref<128x128xf32, #tpu.memory_space<vmem>>, vector<128x128xf32>
    %c0_2 = arith.constant 0 : index
    %c0_3 = arith.constant 0 : index
    %4 = vector.load %arg2[%c0_2, %c0_3] : memref<128x512xbf16, #tpu.memory_space<vmem>>, vector<128x512xbf16>
    %c0_4 = arith.constant 0 : index
    %c0_5 = arith.constant 0 : index
    %5 = vector.load %arg3[%c0_4, %c0_5] : memref<512x128xbf16, #tpu.memory_space<vmem>>, vector<512x128xbf16>
    %cst = arith.constant dense<0.000000e+00> : vector<128x128xf32>
    %6 = tpu.matmul %4, %5, %cst {dimension_numbers = #tpu.dot_dimension_numbers<[1], [0], [0], [1], [0, 0, 1, 1], [], []>} : vector<128x512xbf16>, vector<512x128xbf16>, vector<128x128xf32> -> vector<128x128xf32>
    %7 = arith.addf %3, %6 : vector<128x128xf32>
    %c0_6 = arith.constant 0 : index
    %c0_7 = arith.constant 0 : index
    %8 = vector.load %arg5[%c0_6, %c0_7] : memref<128x128xf32, #tpu.memory_space<vmem>>, vector<128x128xf32>
    tpu.vector_store %arg5[%c0_6, %c0_7], %7 {strides = array<i32>} : memref<128x128xf32, #tpu.memory_space<vmem>>, vector<128x128xf32>,
    %c0_i32_8 = arith.constant 0 : i32
    %9 = arith.cmpi eq, %arg1, %c0_i32_8 : i32
    %10 = arith.extui %9 : i1 to i32
    %c0_i32_9 = arith.constant 0 : i32
    %11 = arith.cmpi ne, %10, %c0_i32_9 : i32
    scf.if %11 {
      %c0_10 = arith.constant 0 : index
      %c0_11 = arith.constant 0 : index
      %12 = vector.load %arg5[%c0_10, %c0_11] : memref<128x128xf32, #tpu.memory_space<vmem>>, vector<128x128xf32>
      %c0_12 = arith.constant 0 : index
      %c0_13 = arith.constant 0 : index
      %13 = vector.load %arg4[%c0_12, %c0_13] : memref<128x128xf32, #tpu.memory_space<vmem>>, vector<128x128xf32>
      tpu.vector_store %arg4[%c0_12, %c0_13], %12 {strides = array<i32>} : memref<128x128xf32, #tpu.memory_space<vmem>>, vector<128x128xf32>,
    } else {
    }
    return
  }
  func.func @transform_0(%arg0: i32, %arg1: i32) -> (i32, i32) {
    %c0_i32 = arith.constant 0 : i32
    return %arg0, %arg1 : i32, i32
  }
  func.func @transform_1(%arg0: i32, %arg1: i32) -> (i32, i32) {
    %c0_i32 = arith.constant 0 : i32
    %c0_i32_0 = arith.constant 0 : i32
    return %arg1, %c0_i32 : i32, i32
  }
  func.func @transform_2(%arg0: i32, %arg1: i32) -> (i32, i32) {
    %c0_i32 = arith.constant 0 : i32
    %c0_i32_0 = arith.constant 0 : i32
    return %arg0, %c0_i32 : i32, i32
  }
}

</mosaic_0001>

<bundles_post_ra>
// kernel: gcn_layer_forward.1
= control target key start
LH: loop header
LB: loop body
LE: loop exit
PB: predicated region body
PF: predicated region fallthrough
CT: control target
= control target key end

     0   :  { %s1433_s1 = inlined_call_operand.vmem [shape: bf16[512,128], index: 1, kind: input, shape index: {}]   ;;  %s1434_s0 = inlined_call_operand.vmem [shape: bf16[128,512], index: 0, kind: input, shape index: {}]   ;;  %s1435_s2 = inlined_call_operand.vmem [shape: f32[128,128], index: 2, kind: output, shape index: {}]  }
   0x1   :  { %v1057_v0 = vld [vmem:[%s1433_s1 + $0x38] sm:$0xff]  ;;  %v1056_v4 = vld [vmem:[%s1433_s1 + $0x30] sm:$0xff]  ;;  %v1055_v8 = vld [vmem:[%s1433_s1 + $0x28] sm:$0xff] }
   0x2   :  { %v1065_v1 = vld [vmem:[%s1433_s1 + $0x78] sm:$0xff]  ;;  %495 = vmatpush.bf16.msra.mxu0 %v1057_v0  ;;  %v1064_v5 = vld [vmem:[%s1433_s1 + $0x70] sm:$0xff]  ;;  %v1063_v9 = vld [vmem:[%s1433_s1 + $0x68] sm:$0xff] }
   0x3   :  { %v1073_v2 = vld [vmem:[%s1433_s1 + $0xb8] sm:$0xff]  ;;  %544 = vmatpush.bf16.msra.mxu1 %v1065_v1  ;;  %v1072_v6 = vld [vmem:[%s1433_s1 + $0xb0] sm:$0xff]  ;;  %v1071_v10 = vld [vmem:[%s1433_s1 + $0xa8] sm:$0xff] }
   0x4   :  { %v1081_v3 = vld [vmem:[%s1433_s1 + $0xf8] sm:$0xff]  ;;  %593 = vmatpush.bf16.msra.mxu2 %v1073_v2  ;;  %v1080_v7 = vld [vmem:[%s1433_s1 + $0xf0] sm:$0xff]  ;;  %v1079_v11 = vld [vmem:[%s1433_s1 + $0xe8] sm:$0xff] }
   0x5   :  { %642 = vmatpush.bf16.msra.mxu3 %v1081_v3  ;;  %v1054_v12 = vld [vmem:[%s1433_s1 + $0x20] sm:$0xff]  ;;  %v1053_v16 = vld [vmem:[%s1433_s1 + $0x18] sm:$0xff]  ;;  %v1052_v20 = vld [vmem:[%s1433_s1 + $0x10] sm:$0xff] }
   0x6   :  { %496 = vmatpush.bf16.msra.mxu0 %v1056_v4  ;;  %v1062_v13 = vld [vmem:[%s1433_s1 + $0x60] sm:$0xff]  ;;  %v1061_v17 = vld [vmem:[%s1433_s1 + $0x58] sm:$0xff]  ;;  %v1060_v21 = vld [vmem:[%s1433_s1 + $0x50] sm:$0xff] }
   0x7   :  { %545 = vmatpush.bf16.msra.mxu1 %v1064_v5  ;;  %v1070_v14 = vld [vmem:[%s1433_s1 + $0xa0] sm:$0xff]  ;;  %v1069_v18 = vld [vmem:[%s1433_s1 + $0x98] sm:$0xff]  ;;  %v1068_v22 = vld [vmem:[%s1433_s1 + $0x90] sm:$0xff] }
   0x8   :  { %594 = vmatpush.bf16.msra.mxu2 %v1072_v6  ;;  %v1078_v15 = vld [vmem:[%s1433_s1 + $0xe0] sm:$0xff]  ;;  %v1077_v19 = vld [vmem:[%s1433_s1 + $0xd8] sm:$0xff]  ;;  %v1076_v23 = vld [vmem:[%s1433_s1 + $0xd0] sm:$0xff] }
   0x9   :  { %643 = vmatpush.bf16.msra.mxu3 %v1080_v7  ;;  %v1051_v24 = vld [vmem:[%s1433_s1 + $0x8] sm:$0xff]  ;;  %v1050_v28 = vld [vmem:[%s1433_s1] sm:$0xff]  ;;  %v1020_v33 = vld [vmem:[%s1434_s0 + $0xc] sm:$0xf0] }
   0xa   :  { %497 = vmatpush.bf16.msra.mxu0 %v1055_v8  ;;  %v1059_v25 = vld [vmem:[%s1433_s1 + $0x48] sm:$0xff]  ;;  %v1058_v29 = vld [vmem:[%s1433_s1 + $0x40] sm:$0xff]  ;;  %v766_v35 = vld [vmem:[%s1434_s0 + $0x10] sm:$0xf0] }
   0xb   :  { %546 = vmatpush.bf16.msra.mxu1 %v1063_v9  ;;  %v1067_v26 = vld [vmem:[%s1433_s1 + $0x88] sm:$0xff]  ;;  %v1066_v30 = vld [vmem:[%s1433_s1 + $0x80] sm:$0xff]  ;;  %v1021_v37 = vld [vmem:[%s1434_s0 + $0x14] sm:$0xf0] }
   0xc   :  { %595 = vmatpush.bf16.msra.mxu2 %v1071_v10  ;;  %v1075_v27 = vld [vmem:[%s1433_s1 + $0xc8] sm:$0xff]  ;;  %v1074_v31 = vld [vmem:[%s1433_s1 + $0xc0] sm:$0xff]  ;;  %v774_v39 = vld [vmem:[%s1434_s0 + $0x18] sm:$0xf0] }
   0xd   :  { %644 = vmatpush.bf16.msra.mxu3 %v1079_v11  ;;  %v764_v32 = vld [vmem:[%s1434_s0] sm:$0xf]  ;;  %v1018_v34 = vld [vmem:[%s1434_s0 + $0x4] sm:$0xf]  ;;  %v772_v36 = vld [vmem:[%s1434_s0 + $0x8] sm:$0xf] }
   0xe   :  { %498 = vmatpush.bf16.msra.mxu0 %v1054_v12  ;;  %v1019_v38 = vld [vmem:[%s1434_s0 + $0xc] sm:$0xf]  ;;  %v765_v40 = vor.u32 %v1020_v33, %v764_v32  ;;  %v769_v41 = vor.u32 %v1018_v34, %v766_v35  ;;  %v773_v42 = vor.u32 %v1021_v37, %v772_v36  ;;  %v780_v44 = vld [vmem:[%s1434_s0 + $0x20] sm:$0xf]  ;;  %v1024_v45 = vld [vmem:[%s1434_s0 + $0x2c] sm:$0xf0] }
   0xf   :  { %547 = vmatpush.bf16.msra.mxu1 %v1062_v13  ;;  %v777_v43 = vor.u32 %v1019_v38, %v774_v39  ;;  %v1022_v46 = vld [vmem:[%s1434_s0 + $0x24] sm:$0xf]  ;;  %v782_v47 = vld [vmem:[%s1434_s0 + $0x30] sm:$0xf0]  ;;  %v788_v48 = vld [vmem:[%s1434_s0 + $0x28] sm:$0xf]  ;;  %v781_v52 = vor.u32 %v1024_v45, %v780_v44 }
  0x10   :  { %596 = vmatpush.bf16.msra.mxu2 %v1070_v14  ;;  %v1025_v49 = vld [vmem:[%s1434_s0 + $0x34] sm:$0xf0]  ;;  %v1023_v50 = vld [vmem:[%s1434_s0 + $0x2c] sm:$0xf]  ;;  %v790_v51 = vld [vmem:[%s1434_s0 + $0x38] sm:$0xf0]  ;;  %v785_v53 = vor.u32 %v1022_v46, %v782_v47 }
  0x11   :  { %645 = vmatpush.bf16.msra.mxu3 %v1078_v15  ;;  %v789_v54 = vor.u32 %v1025_v49, %v788_v48  ;;  %v793_v55 = vor.u32 %v1023_v50, %v790_v51  ;;  %v796_v56 = vld [vmem:[%s1434_s0 + $0x40] sm:$0xf]  ;;  %v1028_v57 = vld [vmem:[%s1434_s0 + $0x4c] sm:$0xf0]  ;;  %v1026_v58 = vld [vmem:[%s1434_s0 + $0x44] sm:$0xf] }
  0x12   :  { %499 = vmatpush.bf16.msra.mxu0 %v1053_v16  ;;  %v798_v59 = vld [vmem:[%s1434_s0 + $0x50] sm:$0xf0]  ;;  %v804_v60 = vld [vmem:[%s1434_s0 + $0x48] sm:$0xf]  ;;  %v1029_v61 = vld [vmem:[%s1434_s0 + $0x54] sm:$0xf0]  ;;  %v797_v0 = vor.u32 %v1028_v57, %v796_v56 }
  0x13   :  { %548 = vmatpush.bf16.msra.mxu1 %v1061_v17  ;;  %v1027_v62 = vld [vmem:[%s1434_s0 + $0x4c] sm:$0xf]  ;;  %v806_v63 = vld [vmem:[%s1434_s0 + $0x58] sm:$0xf0]  ;;  %v801_v1 = vor.u32 %v1026_v58, %v798_v59  ;;  %v805_v2 = vor.u32 %v1029_v61, %v804_v60  ;;  %v812_v4 = vld [vmem:[%s1434_s0 + $0x60] sm:$0xf] }
  0x14   :  { %597 = vmatpush.bf16.msra.mxu2 %v1069_v18  ;;  %v809_v3 = vor.u32 %v1027_v62, %v806_v63  ;;  %v1032_v5 = vld [vmem:[%s1434_s0 + $0x6c] sm:$0xf0]  ;;  %v1030_v6 = vld [vmem:[%s1434_s0 + $0x64] sm:$0xf]  ;;  %v814_v7 = vld [vmem:[%s1434_s0 + $0x70] sm:$0xf0] }
  0x15   :  { %646 = vmatpush.bf16.msra.mxu3 %v1077_v19  ;;  %v820_v8 = vld [vmem:[%s1434_s0 + $0x68] sm:$0xf]  ;;  %v1033_v9 = vld [vmem:[%s1434_s0 + $0x74] sm:$0xf0]  ;;  %v1031_v10 = vld [vmem:[%s1434_s0 + $0x6c] sm:$0xf]  ;;  %v813_v12 = vor.u32 %v1032_v5, %v812_v4  ;;  %v817_v13 = vor.u32 %v1030_v6, %v814_v7 }
  0x16   :  { %500 = vmatpush.bf16.msra.mxu0 %v1052_v20  ;;  %v822_v11 = vld [vmem:[%s1434_s0 + $0x78] sm:$0xf0]  ;;  %v821_v14 = vor.u32 %v1033_v9, %v820_v8  ;;  %v828_v16 = vld [vmem:[%s1434_s0 + $0x80] sm:$0xf]  ;;  %v1036_v17 = vld [vmem:[%s1434_s0 + $0x8c] sm:$0xf0] }
  0x17   :  { %549 = vmatpush.bf16.msra.mxu1 %v1060_v21  ;;  %v825_v15 = vor.u32 %v1031_v10, %v822_v11  ;;  %v1034_v18 = vld [vmem:[%s1434_s0 + $0x84] sm:$0xf]  ;;  %v830_v19 = vld [vmem:[%s1434_s0 + $0x90] sm:$0xf0]  ;;  %v836_v20 = vld [vmem:[%s1434_s0 + $0x88] sm:$0xf] }
  0x18   :  { %598 = vmatpush.bf16.msra.mxu2 %v1068_v22  ;;  %v1037_v21 = vld [vmem:[%s1434_s0 + $0x94] sm:$0xf0]  ;;  %v1035_v22 = vld [vmem:[%s1434_s0 + $0x8c] sm:$0xf]  ;;  %v852_v32 = vld [vmem:[%s1434_s0 + $0xa8] sm:$0xf] }
  0x19   :  { %647 = vmatpush.bf16.msra.mxu3 %v1076_v23  ;;  %v838_v23 = vld [vmem:[%s1434_s0 + $0x98] sm:$0xf0]  ;;  %v1041_v33 = vld [vmem:[%s1434_s0 + $0xb4] sm:$0xf0]  ;;  %v1039_v34 = vld [vmem:[%s1434_s0 + $0xac] sm:$0xf] }
  0x1a   :  { %501 = vmatpush.bf16.msra.mxu0 %v1051_v24  ;;  %v829_v24 = vor.u32 %v1036_v17, %v828_v16  ;;  %v854_v35 = vld [vmem:[%s1434_s0 + $0xb8] sm:$0xf0]  ;;  %v853_v38 = vor.u32 %v1041_v33, %v852_v32  ;;  %v868_v44 = vld [vmem:[%s1434_s0 + $0xc8] sm:$0xf]  ;;  %v1045_v45 = vld [vmem:[%s1434_s0 + $0xd4] sm:$0xf0] }
  0x1b   :  { %550 = vmatpush.bf16.msra.mxu1 %v1059_v25  ;;  %v833_v25 = vor.u32 %v1034_v18, %v830_v19  ;;  %v857_v39 = vor.u32 %v1039_v34, %v854_v35  ;;  %v1043_v46 = vld [vmem:[%s1434_s0 + $0xcc] sm:$0xf]  ;;  %v870_v47 = vld [vmem:[%s1434_s0 + $0xd8] sm:$0xf0]  ;;  %v869_v50 = vor.u32 %v1045_v45, %v868_v44  ;;  %v884_v56 = vld [vmem:[%s1434_s0 + $0xe8] sm:$0xf] }
  0x1c   :  { %599 = vmatpush.bf16.msra.mxu2 %v1067_v26  ;;  %v837_v26 = vor.u32 %v1037_v21, %v836_v20  ;;  %v873_v51 = vor.u32 %v1043_v46, %v870_v47  ;;  %v1049_v57 = vld [vmem:[%s1434_s0 + $0xf4] sm:$0xf0]  ;;  %v1047_v58 = vld [vmem:[%s1434_s0 + $0xec] sm:$0xf]  ;;  %v886_v59 = vld [vmem:[%s1434_s0 + $0xf8] sm:$0xf0] }
  0x1d   :  { %648 = vmatpush.bf16.msra.mxu3 %v1075_v27  ;;  %v841_v27 = vor.u32 %v1035_v22, %v838_v23  ;;  %v885_v62 = vor.u32 %v1049_v57, %v884_v56  ;;  %v889_v63 = vor.u32 %v1047_v58, %v886_v59 }
  0x1e   :  { %502 = vmatpush.bf16.msra.mxu0 %v1050_v28  ;;  %v844_v28 = vld [vmem:[%s1434_s0 + $0xa0] sm:$0xf] }
  0x1f   :  { %551 = vmatpush.bf16.msra.mxu1 %v1058_v29  ;;  %v1040_v29 = vld [vmem:[%s1434_s0 + $0xac] sm:$0xf0] }
  0x20   :  { %600 = vmatpush.bf16.msra.mxu2 %v1066_v30  ;;  %v1038_v30 = vld [vmem:[%s1434_s0 + $0xa4] sm:$0xf]  ;;  %v845_v36 = vor.u32 %v1040_v29, %v844_v28 }
  0x21   :  { %649 = vmatpush.bf16.msra.mxu3 %v1074_v31  ;;  %503 = vmatmul.bf16.vlgmr.msra.gmra.mxu0 %v765_v40  ;;  %v846_v31 = vld [vmem:[%s1434_s0 + $0xb0] sm:$0xf0]  ;;  %v860_v40 = vld [vmem:[%s1434_s0 + $0xc0] sm:$0xf] }
  0x22   :  { %552 = vmatmul.bf16.vlgmr.msra.gmra.mxu1 %v769_v41  ;;  %v849_v37 = vor.u32 %v1038_v30, %v846_v31  ;;  %v1044_v41 = vld [vmem:[%s1434_s0 + $0xcc] sm:$0xf0] }
  0x23   :  { %601 = vmatmul.bf16.vlgmr.msra.gmra.mxu2 %v773_v42  ;;  %v1042_v42 = vld [vmem:[%s1434_s0 + $0xc4] sm:$0xf]  ;;  %v861_v48 = vor.u32 %v1044_v41, %v860_v40 }
  0x24   :  { %650 = vmatmul.bf16.vlgmr.msra.gmra.mxu3 %v777_v43  ;;  %v862_v43 = vld [vmem:[%s1434_s0 + $0xd0] sm:$0xf0] }
  0x25   :  { %v865_v49 = vor.u32 %v1042_v42, %v862_v43 }
  0x31   :  { %508 = vmatmul.bf16.gmra.mxu0 %v781_v52  ;;  %v876_v52 = vld [vmem:[%s1434_s0 + $0xe0] sm:$0xf] }
  0x32   :  { %557 = vmatmul.bf16.gmra.mxu1 %v785_v53  ;;  %v1048_v53 = vld [vmem:[%s1434_s0 + $0xec] sm:$0xf0] }
  0x33   :  { %606 = vmatmul.bf16.gmra.mxu2 %v789_v54  ;;  %v1046_v54 = vld [vmem:[%s1434_s0 + $0xe4] sm:$0xf]  ;;  %v877_v60 = vor.u32 %v1048_v53, %v876_v52 }
  0x34   :  { %655 = vmatmul.bf16.gmra.mxu3 %v793_v55  ;;  %v878_v55 = vld [vmem:[%s1434_s0 + $0xf0] sm:$0xf0] }
  0x35   :  { %v881_v61 = vor.u32 %v1046_v54, %v878_v55 }
  0x41   :  { %513 = vmatmul.bf16.gmra.mxu0 %v797_v0 }
  0x42   :  { %562 = vmatmul.bf16.gmra.mxu1 %v801_v1 }
  0x43   :  { %611 = vmatmul.bf16.gmra.mxu2 %v805_v2 }
  0x44   :  { %660 = vmatmul.bf16.gmra.mxu3 %v809_v3 }
  0x51   :  { %518 = vmatmul.bf16.gmra.mxu0 %v813_v12 }
  0x52   :  { %567 = vmatmul.bf16.gmra.mxu1 %v817_v13 }
  0x53   :  { %616 = vmatmul.bf16.gmra.mxu2 %v821_v14 }
  0x54   :  { %665 = vmatmul.bf16.gmra.mxu3 %v825_v15 }
  0x61   :  { %523 = vmatmul.bf16.gmra.mxu0 %v829_v24 }
  0x62   :  { %572 = vmatmul.bf16.gmra.mxu1 %v833_v25 }
  0x63   :  { %621 = vmatmul.bf16.gmra.mxu2 %v837_v26 }
  0x64   :  { %670 = vmatmul.bf16.gmra.mxu3 %v841_v27 }
  0x71   :  { %528 = vmatmul.bf16.gmra.mxu0 %v845_v36 }
  0x72   :  { %577 = vmatmul.bf16.gmra.mxu1 %v849_v37 }
  0x73   :  { %626 = vmatmul.bf16.gmra.mxu2 %v853_v38 }
  0x74   :  { %675 = vmatmul.bf16.gmra.mxu3 %v857_v39 }
  0x81   :  { %533 = vmatmul.bf16.gmra.mxu0 %v861_v48 }
  0x82   :  { %582 = vmatmul.bf16.gmra.mxu1 %v865_v49 }
  0x83   :  { %631 = vmatmul.bf16.gmra.mxu2 %v869_v50 }
  0x84   :  { %680 = vmatmul.bf16.gmra.mxu3 %v873_v51 }
  0x91   :  { %538 = vmatmul.bf16.gmra.mxu0 %v877_v60 }
  0x92   :  { %587 = vmatmul.bf16.gmra.mxu1 %v881_v61 }
  0x93   :  { %636 = vmatmul.bf16.gmra.mxu2 %v885_v62 }
  0x94   :  { %685 = vmatmul.bf16.gmra.mxu3 %v889_v63 }
  0x9e   :  { %v504_v0 = vpop.f32.mrf.mxu0 }
  0x9f   :  { %v553_v1 = vpop.f32.mrf.mxu1 }
  0xa0   :  { %v554_v2 = vadd.f32 %v553_v1, %v504_v0 }
  0xa6   :  { %v602_v3 = vpop.f32.mrf.mxu2  ;;  %v506_v6 = vpop.f32.mrf.mxu0 }
  0xa7   :  { %v651_v4 = vpop.f32.mrf.mxu3  ;;  %v603_v5 = vadd.f32 %v602_v3, %v554_v2  ;;  %v555_v7 = vpop.f32.mrf.mxu1 }
  0xa8   :  { %v556_v9 = vadd.f32 %v555_v7, %v506_v6 }
  0xa9   :  { %v652_v8 = vadd.f32 %v651_v4, %v603_v5 }
  0xab   :  { %742 = vst [vmem:[%s1435_s2] sm:$0xff] %v652_v8 }
  0xae   :  { %v604_v10 = vpop.f32.mrf.mxu2  ;;  %v509_v13 = vpop.f32.mrf.mxu0 }
  0xaf   :  { %v653_v11 = vpop.f32.mrf.mxu3  ;;  %v605_v12 = vadd.f32 %v604_v10, %v556_v9  ;;  %v558_v14 = vpop.f32.mrf.mxu1 }
  0xb0   :  { %v559_v16 = vadd.f32 %v558_v14, %v509_v13 }
  0xb1   :  { %v654_v15 = vadd.f32 %v653_v11, %v605_v12 }
  0xb3   :  { %743 = vst [vmem:[%s1435_s2 + $0x8] sm:$0xff] %v654_v15 }
  0xb6   :  { %v607_v17 = vpop.f32.mrf.mxu2  ;;  %v511_v20 = vpop.f32.mrf.mxu0 }
  0xb7   :  { %v656_v18 = vpop.f32.mrf.mxu3  ;;  %v608_v19 = vadd.f32 %v607_v17, %v559_v16  ;;  %v560_v21 = vpop.f32.mrf.mxu1 }
  0xb8   :  { %v561_v23 = vadd.f32 %v560_v21, %v511_v20 }
  0xb9   :  { %v657_v22 = vadd.f32 %v656_v18, %v608_v19 }
  0xbb   :  { %744 = vst [vmem:[%s1435_s2 + $0x10] sm:$0xff] %v657_v22 }
  0xbe   :  { %v609_v24 = vpop.f32.mrf.mxu2  ;;  %v514_v27 = vpop.f32.mrf.mxu0 }
  0xbf   :  { %v658_v25 = vpop.f32.mrf.mxu3  ;;  %v610_v26 = vadd.f32 %v609_v24, %v561_v23  ;;  %v563_v28 = vpop.f32.mrf.mxu1 }
  0xc0   :  { %v564_v30 = vadd.f32 %v563_v28, %v514_v27 }
  0xc1   :  { %v659_v29 = vadd.f32 %v658_v25, %v610_v26 }
  0xc3   :  { %745 = vst [vmem:[%s1435_s2 + $0x18] sm:$0xff] %v659_v29 }
  0xc6   :  { %v612_v31 = vpop.f32.mrf.mxu2  ;;  %v516_v34 = vpop.f32.mrf.mxu0 }
  0xc7   :  { %v661_v32 = vpop.f32.mrf.mxu3  ;;  %v613_v33 = vadd.f32 %v612_v31, %v564_v30  ;;  %v565_v35 = vpop.f32.mrf.mxu1 }
  0xc8   :  { %v566_v37 = vadd.f32 %v565_v35, %v516_v34 }
  0xc9   :  { %v662_v36 = vadd.f32 %v661_v32, %v613_v33 }
  0xcb   :  { %746 = vst [vmem:[%s1435_s2 + $0x20] sm:$0xff] %v662_v36 }
  0xce   :  { %v614_v38 = vpop.f32.mrf.mxu2  ;;  %v519_v41 = vpop.f32.mrf.mxu0 }
  0xcf   :  { %v663_v39 = vpop.f32.mrf.mxu3  ;;  %v615_v40 = vadd.f32 %v614_v38, %v566_v37  ;;  %v568_v42 = vpop.f32.mrf.mxu1 }
  0xd0   :  { %v569_v44 = vadd.f32 %v568_v42, %v519_v41 }
  0xd1   :  { %v664_v43 = vadd.f32 %v663_v39, %v615_v40 }
  0xd3   :  { %747 = vst [vmem:[%s1435_s2 + $0x28] sm:$0xff] %v664_v43 }
  0xd6   :  { %v617_v45 = vpop.f32.mrf.mxu2  ;;  %v521_v48 = vpop.f32.mrf.mxu0 }
  0xd7   :  { %v666_v46 = vpop.f32.mrf.mxu3  ;;  %v618_v47 = vadd.f32 %v617_v45, %v569_v44  ;;  %v570_v49 = vpop.f32.mrf.mxu1 }
  0xd8   :  { %v571_v51 = vadd.f32 %v570_v49, %v521_v48 }
  0xd9   :  { %v667_v50 = vadd.f32 %v666_v46, %v618_v47 }
  0xdb   :  { %748 = vst [vmem:[%s1435_s2 + $0x30] sm:$0xff] %v667_v50 }
  0xde   :  { %v619_v52 = vpop.f32.mrf.mxu2  ;;  %v524_v55 = vpop.f32.mrf.mxu0 }
  0xdf   :  { %v668_v53 = vpop.f32.mrf.mxu3  ;;  %v620_v54 = vadd.f32 %v619_v52, %v571_v51  ;;  %v573_v56 = vpop.f32.mrf.mxu1 }
  0xe0   :  { %v574_v58 = vadd.f32 %v573_v56, %v524_v55 }
  0xe1   :  { %v669_v57 = vadd.f32 %v668_v53, %v620_v54 }
  0xe3   :  { %749 = vst [vmem:[%s1435_s2 + $0x38] sm:$0xff] %v669_v57 }
  0xe6   :  { %v622_v59 = vpop.f32.mrf.mxu2  ;;  %v526_v62 = vpop.f32.mrf.mxu0 }
  0xe7   :  { %v671_v60 = vpop.f32.mrf.mxu3  ;;  %v623_v61 = vadd.f32 %v622_v59, %v574_v58  ;;  %v575_v63 = vpop.f32.mrf.mxu1 }
  0xe8   :  { %v576_v1 = vadd.f32 %v575_v63, %v526_v62 }
  0xe9   :  { %v672_v0 = vadd.f32 %v671_v60, %v623_v61 }
  0xeb   :  { %750 = vst [vmem:[%s1435_s2 + $0x40] sm:$0xff] %v672_v0 }
  0xee   :  { %v624_v2 = vpop.f32.mrf.mxu2  ;;  %v529_v5 = vpop.f32.mrf.mxu0 }
  0xef   :  { %v673_v3 = vpop.f32.mrf.mxu3  ;;  %v625_v4 = vadd.f32 %v624_v2, %v576_v1  ;;  %v578_v6 = vpop.f32.mrf.mxu1 }
  0xf0   :  { %v579_v8 = vadd.f32 %v578_v6, %v529_v5 }
  0xf1   :  { %v674_v7 = vadd.f32 %v673_v3, %v625_v4 }
  0xf3   :  { %751 = vst [vmem:[%s1435_s2 + $0x48] sm:$0xff] %v674_v7 }
  0xf6   :  { %v627_v9 = vpop.f32.mrf.mxu2  ;;  %v531_v12 = vpop.f32.mrf.mxu0 }
  0xf7   :  { %v676_v10 = vpop.f32.mrf.mxu3  ;;  %v628_v11 = vadd.f32 %v627_v9, %v579_v8  ;;  %v580_v13 = vpop.f32.mrf.mxu1 }
  0xf8   :  { %v581_v15 = vadd.f32 %v580_v13, %v531_v12 }
  0xf9   :  { %v677_v14 = vadd.f32 %v676_v10, %v628_v11 }
  0xfb   :  { %752 = vst [vmem:[%s1435_s2 + $0x50] sm:$0xff] %v677_v14 }
  0xfe   :  { %v629_v16 = vpop.f32.mrf.mxu2  ;;  %v534_v19 = vpop.f32.mrf.mxu0 }
  0xff   :  { %v678_v17 = vpop.f32.mrf.mxu3  ;;  %v630_v18 = vadd.f32 %v629_v16, %v581_v15  ;;  %v583_v20 = vpop.f32.mrf.mxu1 }
 0x100   :  { %v584_v22 = vadd.f32 %v583_v20, %v534_v19 }
 0x101   :  { %v679_v21 = vadd.f32 %v678_v17, %v630_v18 }
 0x103   :  { %753 = vst [vmem:[%s1435_s2 + $0x58] sm:$0xff] %v679_v21 }
 0x106   :  { %v632_v23 = vpop.f32.mrf.mxu2  ;;  %v536_v26 = vpop.f32.mrf.mxu0 }
 0x107   :  { %v681_v24 = vpop.f32.mrf.mxu3  ;;  %v633_v25 = vadd.f32 %v632_v23, %v584_v22  ;;  %v585_v27 = vpop.f32.mrf.mxu1 }
 0x108   :  { %v586_v29 = vadd.f32 %v585_v27, %v536_v26 }
 0x109   :  { %v682_v28 = vadd.f32 %v681_v24, %v633_v25 }
 0x10b   :  { %754 = vst [vmem:[%s1435_s2 + $0x60] sm:$0xff] %v682_v28 }
 0x10e   :  { %v634_v30 = vpop.f32.mrf.mxu2  ;;  %v539_v33 = vpop.f32.mrf.mxu0 }
 0x10f   :  { %v683_v31 = vpop.f32.mrf.mxu3  ;;  %v635_v32 = vadd.f32 %v634_v30, %v586_v29  ;;  %v588_v34 = vpop.f32.mrf.mxu1 }
 0x110   :  { %v589_v36 = vadd.f32 %v588_v34, %v539_v33 }
 0x111   :  { %v684_v35 = vadd.f32 %v683_v31, %v635_v32 }
 0x113   :  { %755 = vst [vmem:[%s1435_s2 + $0x68] sm:$0xff] %v684_v35 }
 0x116   :  { %v637_v37 = vpop.f32.mrf.mxu2  ;;  %v541_v41 = vpop.f32.mrf.mxu0 }
 0x117   :  { %v686_v38 = vpop.f32.mrf.mxu3  ;;  %v638_v39 = vadd.f32 %v637_v37, %v589_v36  ;;  %v590_v42 = vpop.f32.mrf.mxu1 }
 0x118   :  { %v591_v43 = vadd.f32 %v590_v42, %v541_v41 }
 0x119   :  { %v687_v40 = vadd.f32 %v686_v38, %v638_v39 }
 0x11b   :  { %756 = vst [vmem:[%s1435_s2 + $0x70] sm:$0xff] %v687_v40 }
 0x11e   :  { %v639_v44 = vpop.f32.mrf.mxu2 }
 0x11f   :  { %v640_v45 = vadd.f32 %v639_v44, %v591_v43  ;;  %v688_v46 = vpop.f32.mrf.mxu3 }
 0x121   :  { %v689_v47 = vadd.f32 %v688_v46, %v640_v45 }
 0x123   :  { %757 = vst [vmem:[%s1435_s2 + $0x78] sm:$0xff] %v689_v47 }

</bundles_post_ra>
